<compile_context>
chip_gen: v7x
topology: tpu7x:2x2x1
jax: 0.10.0
libtpu: 0.0.40
codegen_flags: <defaults>
</compile_context>

<pallas_src>
import functools

import jax
import jax.numpy as jnp
from jax.experimental import pallas as pl
from jax.experimental.pallas import tpu as pltpu


def _round_up(x, m):
    return (x + m - 1) // m * m


def _pick_tile(n, max_tile=512):
    """Largest divisor of n that is a multiple of 32 and <= max_tile, else n."""
    if n <= max_tile:
        return n
    for t in range(max_tile, 31, -1):
        if t % 32 == 0 and n % t == 0:
            return t
    return n


def _prepare_params(W, a_param, gamma, beta, f_pad, f_aug):
    """Build the padded/augmented parameters used by kernel and reference."""
    F_in, F_out = W.shape
    W = W.astype(jnp.float32)
    a1 = a_param[:F_out, 0].astype(jnp.float32)
    a2 = a_param[F_out:, 0].astype(jnp.float32)
    wa1 = W @ a1                                            # (F_in,)
    wa2 = W @ a2                                            # (F_in,)
    W_aug = jnp.zeros((F_in, f_aug), jnp.float32)
    W_aug = W_aug.at[:, :F_out].set(W)
    W_aug = W_aug.at[:, f_pad].set(wa1)                     # s1 column
    W_aug_bf16 = W_aug.astype(jnp.bfloat16)
    a2w = wa2.reshape(1, F_in).astype(jnp.float32)          # (1, F_in)
    gamma_pad = jnp.zeros((1, f_pad), jnp.float32).at[0, :F_out].set(gamma)
    beta_pad = jnp.zeros((1, f_pad), jnp.float32).at[0, :F_out].set(beta)
    featmask = jnp.zeros((1, f_pad), jnp.float32).at[0, :F_out].set(1.0)
    return W_aug_bf16, a2w, gamma_pad, beta_pad, featmask


def _gat_kernel(h_ref, adj_ref, w_ref, a2w_ref, gamma_ref, beta_ref, mask_ref,
                out_ref, wha_sc, whbf_sc, s2_sc,
                *, alpha, eps, f_out, f_pad, tile_i):
    # h_ref:     (1, N, F_in)   f32
    # adj_ref:   (1, TILE_I, N) int8
    # w_ref:     (F_in, F_aug)  bf16   cols: [W | pad | W@a1 | pad]
    # a2w_ref:   (1, F_in)      f32    (W @ a2)^T
    # gamma/beta/mask: (1, F_pad) f32
    # out_ref:   (1, TILE_I, F_pad) f32
    # wha_sc:    (N, F_aug) f32   scratch — Wh + s1 column, resident per batch
    # whbf_sc:   (N, F_pad) bf16  scratch — Wh pre-cast for the MXU
    # s2_sc:     (1, N) f32       scratch — s2 row, resident per batch
    i = pl.program_id(1)

    @pl.when(i == 0)
    def _():
        h = h_ref[0]                                         # (N, F_in) f32
        # Augmented matmul: one MXU op yields Wh and the s1 score column.
        wha = jnp.dot(h.astype(jnp.bfloat16), w_ref[...],
                      preferred_element_type=jnp.float32)    # (N, F_aug) f32
        wha_sc[...] = wha
        whbf_sc[...] = wha[:, :f_pad].astype(jnp.bfloat16)   # cached bf16 Wh
        # s2[j] = h[j] . (W @ a2) — computed once per batch element (f32).
        s2_sc[...] = jax.lax.dot_general(
            a2w_ref[...], h, (((1,), (1,)), ((), ())),
            preferred_element_type=jnp.float32)              # (1, N)

    row0 = pl.multiple_of(i * tile_i, tile_i)
    s1_tile = wha_sc[pl.ds(row0, tile_i), pl.ds(f_pad, 1)]   # (TILE_I, 1)
    pre = s1_tile + s2_sc[...]                               # (TILE_I, N)

    # Fused LeakyReLU + adjacency mask (scalar fill constant, no full_like).
    e = jnp.where(pre > 0, pre, alpha * pre)
    att = jnp.where(adj_ref[0].astype(jnp.int32) > 0, e, -9.0e15)

    # Row softmax over destination nodes.
    att = att - jnp.max(att, axis=-1, keepdims=True)
    p = jnp.exp(att)
    denom = jnp.sum(p, axis=-1, keepdims=True)
    inv = pl.reciprocal(denom, approx=True)
    inv = inv * (2.0 - denom * inv)        # one Newton step -> ~f32 accurate
    att = p * inv                                            # (TILE_I, N)
    # TODO(synk): attention dropout (training mode) not implemented.

    # h' = att @ Wh  (bf16 MXU inputs, f32 accumulate), residual in f32.
    wh_rows = wha_sc[pl.ds(row0, tile_i), :f_pad]            # (TILE_I, F_pad)
    hp = jnp.dot(att.astype(jnp.bfloat16), whbf_sc[...],
                 preferred_element_type=jnp.float32) + wh_rows

    # LayerNorm over the true F_out features (padded cols of hp are zero).
    inv_f = 1.0 / float(f_out)
    mean = jnp.sum(hp, axis=-1, keepdims=True) * inv_f
    diff = (hp - mean) * mask_ref[...]
    var = jnp.sum(diff * diff, axis=-1, keepdims=True) * inv_f
    y = diff * jax.lax.rsqrt(var + eps) * gamma_ref[...] + beta_ref[...]

    # concat=True -> ELU (alpha=1.0). Padded cols stay 0.
    out_ref[0] = jnp.where(y > 0, y, jnp.exp(y) - 1.0)


def gat_forward(h, adj, W, a_param, gamma, beta, *, alpha=0.2, eps=1e-5):
    """h: (B, N, F_in), adj: (B, N, N), W: (F_in, F_out), a_param: (2*F_out, 1)."""
    B, N, F_in = h.shape
    F_out = W.shape[1]
    F_pad = _round_up(F_out, 128)          # lane-dense output
    F_aug = F_pad + 128                    # extra lane group for the s1 column
    tile_i = _pick_tile(N)
    num_i = N // tile_i

    W_aug_bf16, a2w, gamma_pad, beta_pad, featmask = _prepare_params(
        W, a_param, gamma, beta, F_pad, F_aug)
    adj_i8 = (adj > 0).astype(jnp.int8)

    kernel = functools.partial(
        _gat_kernel, alpha=float(alpha), eps=float(eps),
        f_out=int(F_out), f_pad=int(F_pad), tile_i=int(tile_i))

    flops = int(2 * B * N * F_in * F_aug          # h @ W_aug
                + 2 * B * N * F_in                # s2 row
                + 2 * B * N * N * F_pad           # att @ Wh
                + 12 * B * N * N)                 # elementwise softmax/mask
    transcendentals = int(B * N * N + 4 * B * N)  # exp + recip + rsqrt + ELU
    bytes_accessed = int(h.size * 4 + adj_i8.size + W_aug_bf16.size * 2
                         + B * N * F_pad * 4 + 3 * F_pad * 4 + F_in * 4)

    out_pad = pl.pallas_call(
        kernel,
        out_shape=jax.ShapeDtypeStruct((B, N, F_pad), jnp.float32),
        grid_spec=pltpu.PrefetchScalarGridSpec(
            num_scalar_prefetch=0,
            grid=(B, num_i),
            in_specs=[
                pl.BlockSpec((1, N, F_in), lambda b, i: (b, 0, 0)),
                pl.BlockSpec((1, tile_i, N), lambda b, i: (b, i, 0)),
                pl.BlockSpec((F_in, F_aug), lambda b, i: (0, 0)),
                pl.BlockSpec((1, F_in), lambda b, i: (0, 0)),
                pl.BlockSpec((1, F_pad), lambda b, i: (0, 0)),
                pl.BlockSpec((1, F_pad), lambda b, i: (0, 0)),
                pl.BlockSpec((1, F_pad), lambda b, i: (0, 0)),
            ],
            out_specs=pl.BlockSpec((1, tile_i, F_pad), lambda b, i: (b, i, 0)),
            scratch_shapes=[
                pltpu.VMEM((N, F_aug), jnp.float32),    # Wh | s1 (resident)
                pltpu.VMEM((N, F_pad), jnp.bfloat16),   # Wh in bf16 (resident)
                pltpu.VMEM((1, N), jnp.float32),        # s2 row (resident)
            ],
        ),
        compiler_params=pltpu.CompilerParams(
            dimension_semantics=("parallel", "arbitrary"),
            vmem_limit_bytes=48 * 1024 * 1024,
        ),
        cost_estimate=pl.CostEstimate(
            flops=flops, transcendentals=transcendentals,
            bytes_accessed=bytes_accessed),
    )(h.astype(jnp.float32), adj_i8, W_aug_bf16, a2w, gamma_pad, beta_pad,
      featmask)
    return out_pad[:, :, :F_out]


def gat_reference_matched(h, adj, W, a_param, gamma, beta, *, alpha=0.2,
                          eps=1e-5):
    """Pure-JAX reference mirroring the kernel's numerics (bf16 MXU inputs)."""
    B, N, F_in = h.shape
    F_out = W.shape[1]
    F_pad = _round_up(F_out, 128)
    F_aug = F_pad + 128
    W_aug_bf16, a2w, gamma_pad, beta_pad, featmask = _prepare_params(
        W, a_param, gamma, beta, F_pad, F_aug)

    wha = jnp.einsum("bnf,fk->bnk", h.astype(jnp.bfloat16), W_aug_bf16,
                     preferred_element_type=jnp.float32)
    Wh = wha[..., :F_pad]
    s1 = wha[..., F_pad]                                     # (B, N)
    s2 = jnp.einsum("bnf,f->bn", h, a2w[0])                  # (B, N) f32

    pre = s1[:, :, None] + s2[:, None, :]
    e = jnp.where(pre > 0, pre, alpha * pre)
    att = jnp.where(adj > 0, e, -9.0e15)
    att = att - jnp.max(att, axis=-1, keepdims=True)
    p = jnp.exp(att)
    att = p / jnp.sum(p, axis=-1, keepdims=True)

    hp = jnp.einsum("bij,bjk->bik", att.astype(jnp.bfloat16),
                    Wh.astype(jnp.bfloat16),
                    preferred_element_type=jnp.float32) + Wh
    mean = jnp.sum(hp, axis=-1, keepdims=True) / F_out
    diff = (hp - mean) * featmask
    var = jnp.sum(diff * diff, axis=-1, keepdims=True) / F_out
    y = diff * jax.lax.rsqrt(var + eps) * gamma_pad + beta_pad
    return jnp.where(y > 0, y, jnp.exp(y) - 1.0)[:, :, :F_out]


def gat_reference_f32(h, adj, W, a_param, gamma, beta, *, alpha=0.2, eps=1e-5):
    """Pure-f32 JAX reference mirroring the PyTorch forward (eval mode)."""
    F_out = W.shape[1]
    Wh = jnp.einsum("bnf,fo->bno", h, W)
    a1 = a_param[:F_out, 0]
    a2 = a_param[F_out:, 0]
    pre = (Wh @ a1)[:, :, None] + (Wh @ a2)[:, None, :]
    e = jnp.where(pre > 0, pre, alpha * pre)
    att = jnp.where(adj > 0, e, -9.0e15)
    att = jax.nn.softmax(att, axis=2)
    hp = jnp.einsum("bij,bjo->bio", att, Wh) + Wh
    mean = jnp.mean(hp, axis=-1, keepdims=True)
    var = jnp.mean((hp - mean) ** 2, axis=-1, keepdims=True)
    y = (hp - mean) * jax.lax.rsqrt(var + eps) * gamma + beta
    return jnp.where(y > 0, y, jnp.exp(y) - 1.0)


if __name__ == "__main__":
    B, N, F_IN, F_OUT = 2, 8, 16, 32
    ALPHA = 0.2  # LeakyReLU negative slope

    key = jax.random.PRNGKey(0)
    k_h, k_adj, k_w, k_a = jax.random.split(key, 4)

    h = jax.random.normal(k_h, (B, N, F_IN), dtype=jnp.float32)
    adj = (jax.random.uniform(k_adj, (B, N, N)) > 0.5).astype(jnp.float32)
    adj = jnp.maximum(adj, jnp.eye(N, dtype=jnp.float32)[None])  # self loops

    # Xavier-uniform init, gain=1.414 (deterministic via PRNGKey(0) splits).
    bw = 1.414 * (6.0 / (F_IN + F_OUT)) ** 0.5
    W = jax.random.uniform(k_w, (F_IN, F_OUT), jnp.float32, -bw, bw)
    ba = 1.414 * (6.0 / (2 * F_OUT + 1)) ** 0.5
    a_param = jax.random.uniform(k_a, (2 * F_OUT, 1), jnp.float32, -ba, ba)
    gamma = jnp.ones((F_OUT,), jnp.float32)   # LayerNorm weight
    beta = jnp.zeros((F_OUT,), jnp.float32)   # LayerNorm bias

    out = gat_forward(h, adj, W, a_param, gamma, beta, alpha=ALPHA)
    out = jax.block_until_ready(out)

    # Tight check against a reference that mirrors the kernel's bf16 matmuls.
    ref_m = gat_reference_matched(h, adj, W, a_param, gamma, beta, alpha=ALPHA)
    err_m = float(jnp.max(jnp.abs(out - ref_m)))
    assert err_m < 2e-3, f"mismatch vs matched reference: max_err={err_m}"

    # Coarse semantic sanity check against the full-f32 PyTorch-style forward
    # (gap is only the bf16 MXU inputs used for performance).
    ref_f = gat_reference_f32(h, adj, W, a_param, gamma, beta, alpha=ALPHA)
    err_f = float(jnp.max(jnp.abs(out - ref_f)))
    assert err_f < 0.3, f"mismatch vs f32 reference: max_err={err_f}"

    print("KERNEL_OK")
</pallas_src>

<mosaic_0001>
module attributes {stable_mosaic.version = 11 : i64} {
  func.func @_gat_kernel(%arg0: i32, %arg1: i32, %arg2: memref<1x8x16xf32, #tpu.memory_space<vmem>>, %arg3: memref<1x8x8xi8, #tpu.memory_space<vmem>>, %arg4: memref<16x256xbf16, #tpu.memory_space<vmem>>, %arg5: memref<1x16xf32, #tpu.memory_space<vmem>>, %arg6: memref<1x128xf32, #tpu.memory_space<vmem>>, %arg7: memref<1x128xf32, #tpu.memory_space<vmem>>, %arg8: memref<1x128xf32, #tpu.memory_space<vmem>>, %arg9: memref<1x8x128xf32, #tpu.memory_space<vmem>>, %arg10: memref<8x256xf32, #tpu.memory_space<vmem>>, %arg11: memref<8x128xbf16, #tpu.memory_space<vmem>>, %arg12: memref<1x8xf32, #tpu.memory_space<vmem>>) attributes {dimension_semantics = [#tpu.dimension_semantics<parallel>, #tpu.dimension_semantics<arbitrary>], iteration_bounds = array<i64: 2, 1>, scalar_prefetch = 0 : i64, scratch_operands = 3 : i64, tpu.core_type = #tpu.core_type<tc>, window_params = [{transform_indices = @transform_0, window_bounds = array<i64: 1, 8, 16>}, {transform_indices = @transform_1, window_bounds = array<i64: 1, 8, 8>}, {pipeline_mode = #tpu.pipeline_mode<synchronous>, transform_indices = @transform_2, window_bounds = array<i64: 16, 256>}, {pipeline_mode = #tpu.pipeline_mode<synchronous>, transform_indices = @transform_3, window_bounds = array<i64: 1, 16>}, {pipeline_mode = #tpu.pipeline_mode<synchronous>, transform_indices = @transform_4, window_bounds = array<i64: 1, 128>}, {pipeline_mode = #tpu.pipeline_mode<synchronous>, transform_indices = @transform_5, window_bounds = array<i64: 1, 128>}, {pipeline_mode = #tpu.pipeline_mode<synchronous>, transform_indices = @transform_6, window_bounds = array<i64: 1, 128>}, {transform_indices = @transform_7, window_bounds = array<i64: 1, 8, 128>}]} {
    %c0_i32 = arith.constant 0 : i32
    %0 = arith.cmpi eq, %arg1, %c0_i32 : i32
    %1 = arith.extui %0 : i1 to i32
    %c0_i32_0 = arith.constant 0 : i32
    %2 = arith.cmpi ne, %1, %c0_i32_0 : i32
    scf.if %2 {
      %c0_31 = arith.constant 0 : index
      %c0_32 = arith.constant 0 : index
      %c0_33 = arith.constant 0 : index
      %77 = vector.load %arg2[%c0_31, %c0_32, %c0_33] : memref<1x8x16xf32, #tpu.memory_space<vmem>>, vector<1x8x16xf32>
      %78 = vector.shape_cast %77 : vector<1x8x16xf32> to vector<8x16xf32>
      %79 = arith.truncf %78 : vector<8x16xf32> to vector<8x16xbf16>
      %c0_34 = arith.constant 0 : index
      %c0_35 = arith.constant 0 : index
      %80 = vector.load %arg4[%c0_34, %c0_35] : memref<16x256xbf16, #tpu.memory_space<vmem>>, vector<16x256xbf16>
      %cst_36 = arith.constant dense<0.000000e+00> : vector<8x256xf32>
      %81 = tpu.matmul %79, %80, %cst_36 {dimension_numbers = #tpu.dot_dimension_numbers<[1], [0], [0], [1], [0, 0, 1, 1], [], []>} : vector<8x16xbf16>, vector<16x256xbf16>, vector<8x256xf32> -> vector<8x256xf32>
      %c0_37 = arith.constant 0 : index
      %c0_38 = arith.constant 0 : index
      %82 = vector.load %arg10[%c0_37, %c0_38] : memref<8x256xf32, #tpu.memory_space<vmem>>, vector<8x256xf32>
      tpu.vector_store %arg10[%c0_37, %c0_38], %81 {strides = array<i32>} : memref<8x256xf32, #tpu.memory_space<vmem>>, vector<8x256xf32>,
      %83 = vector.extract_strided_slice %81 {offsets = [0, 0], sizes = [8, 128], strides = [1, 1]} : vector<8x256xf32> to vector<8x128xf32>
      %84 = arith.truncf %83 : vector<8x128xf32> to vector<8x128xbf16>
      %c0_39 = arith.constant 0 : index
      %c0_40 = arith.constant 0 : index
      %85 = vector.load %arg11[%c0_39, %c0_40] : memref<8x128xbf16, #tpu.memory_space<vmem>>, vector<8x128xbf16>
      tpu.vector_store %arg11[%c0_39, %c0_40], %84 {strides = array<i32>} : memref<8x128xbf16, #tpu.memory_space<vmem>>, vector<8x128xbf16>,
      %c0_41 = arith.constant 0 : index
      %c0_42 = arith.constant 0 : index
      %86 = vector.load %arg5[%c0_41, %c0_42] : memref<1x16xf32, #tpu.memory_space<vmem>>, vector<1x16xf32>
      %cst_43 = arith.constant dense<0.000000e+00> : vector<1x8xf32>
      %87 = tpu.matmul %86, %78, %cst_43 {dimension_numbers = #tpu.dot_dimension_numbers<[1], [1], [0], [0], [0, 0, 1, 0], [], []>} : vector<1x16xf32>, vector<8x16xf32>, vector<1x8xf32> -> vector<1x8xf32>
      %c0_44 = arith.constant 0 : index
      %c0_45 = arith.constant 0 : index
      %88 = vector.load %arg12[%c0_44, %c0_45] : memref<1x8xf32, #tpu.memory_space<vmem>>, vector<1x8xf32>
      tpu.vector_store %arg12[%c0_44, %c0_45], %87 {strides = array<i32>} : memref<1x8xf32, #tpu.memory_space<vmem>>, vector<1x8xf32>,
    } else {
    }
    %c8_i32 = arith.constant 8 : i32
    %3 = arith.muli %arg1, %c8_i32 : i32
    %4 = tpu.assume_multiple %3, 8 : i32
    %5 = arith.index_cast %4 : i32 to index
    %c128 = arith.constant 128 : index
    %6 = vector.load %arg10[%5, %c128] : memref<8x256xf32, #tpu.memory_space<vmem>>, vector<8x1xf32>
    %c0 = arith.constant 0 : index
    %c0_1 = arith.constant 0 : index
    %7 = vector.load %arg12[%c0, %c0_1] : memref<1x8xf32, #tpu.memory_space<vmem>>, vector<1x8xf32>
    %8 = vector.broadcast %6 : vector<8x1xf32> to vector<8x8xf32>
    %9 = vector.broadcast %7 : vector<1x8xf32> to vector<8x8xf32>
    %10 = arith.addf %8, %9 : vector<8x8xf32>
    %cst = arith.constant 0.000000e+00 : f32
    %11 = vector.broadcast %cst : f32 to vector<8x8xf32>
    %12 = arith.cmpf ogt, %10, %11 : vector<8x8xf32>
    %cst_2 = arith.constant 2.000000e-01 : f32
    %13 = vector.broadcast %cst_2 : f32 to vector<8x8xf32>
    %14 = arith.mulf %13, %10 : vector<8x8xf32>
    %15 = arith.select %12, %10, %14 : vector<8x8xi1>, vector<8x8xf32>
    %c0_3 = arith.constant 0 : index
    %c0_4 = arith.constant 0 : index
    %c0_5 = arith.constant 0 : index
    %16 = vector.load %arg3[%c0_3, %c0_4, %c0_5] : memref<1x8x8xi8, #tpu.memory_space<vmem>>, vector<1x8x8xi8>
    %17 = vector.shape_cast %16 : vector<1x8x8xi8> to vector<8x8xi8>
    %18 = arith.extsi %17 : vector<8x8xi8> to vector<8x8xi32>
    %c0_i32_6 = arith.constant 0 : i32
    %19 = vector.broadcast %c0_i32_6 : i32 to vector<8x8xi32>
    %20 = arith.cmpi sgt, %18, %19 : vector<8x8xi32>
    %cst_7 = arith.constant -9.000000e+15 : f32
    %21 = vector.broadcast %cst_7 : f32 to vector<8x8xf32>
    %22 = arith.select %20, %15, %21 : vector<8x8xi1>, vector<8x8xf32>
    %cst_8 = arith.constant dense<0xFF800000> : vector<8xf32>
    %23 = vector.multi_reduction <maximumf>, %22, %cst_8 [1] : vector<8x8xf32> to vector<8xf32>
    %24 = vector.shape_cast %23 : vector<8xf32> to vector<8x1xf32>
    %25 = vector.broadcast %24 : vector<8x1xf32> to vector<8x8xf32>
    %26 = arith.subf %22, %25 : vector<8x8xf32>
    %27 = math.exp %26 : vector<8x8xf32>
    %cst_9 = arith.constant dense<0.000000e+00> : vector<8xf32>
    %28 = vector.multi_reduction <add>, %27, %cst_9 [1] : vector<8x8xf32> to vector<8xf32>
    %29 = vector.shape_cast %28 : vector<8xf32> to vector<8x1xf32>
    %30 = tpu.reciprocal %29 {approx = true} : vector<8x1xf32> -> vector<8x1xf32>
    %31 = arith.mulf %29, %30 : vector<8x1xf32>
    %cst_10 = arith.constant 2.000000e+00 : f32
    %32 = vector.broadcast %cst_10 : f32 to vector<8x1xf32>
    %33 = arith.subf %32, %31 : vector<8x1xf32>
    %34 = arith.mulf %30, %33 : vector<8x1xf32>
    %35 = vector.broadcast %34 : vector<8x1xf32> to vector<8x8xf32>
    %36 = arith.mulf %27, %35 : vector<8x8xf32>
    %37 = arith.index_cast %4 : i32 to index
    %c0_11 = arith.constant 0 : index
    %38 = vector.load %arg10[%37, %c0_11] : memref<8x256xf32, #tpu.memory_space<vmem>>, vector<8x128xf32>
    %39 = arith.truncf %36 : vector<8x8xf32> to vector<8x8xbf16>
    %c0_12 = arith.constant 0 : index
    %c0_13 = arith.constant 0 : index
    %40 = vector.load %arg11[%c0_12, %c0_13] : memref<8x128xbf16, #tpu.memory_space<vmem>>, vector<8x128xbf16>
    %cst_14 = arith.constant dense<0.000000e+00> : vector<8x128xf32>
    %41 = tpu.matmul %39, %40, %cst_14 {dimension_numbers = #tpu.dot_dimension_numbers<[1], [0], [0], [1], [0, 0, 1, 1], [], []>} : vector<8x8xbf16>, vector<8x128xbf16>, vector<8x128xf32> -> vector<8x128xf32>
    %42 = arith.addf %41, %38 : vector<8x128xf32>
    %cst_15 = arith.constant dense<0.000000e+00> : vector<8xf32>
    %43 = vector.multi_reduction <add>, %42, %cst_15 [1] : vector<8x128xf32> to vector<8xf32>
    %44 = vector.shape_cast %43 : vector<8xf32> to vector<8x1xf32>
    %cst_16 = arith.constant 3.125000e-02 : f32
    %45 = vector.broadcast %cst_16 : f32 to vector<8x1xf32>
    %46 = arith.mulf %44, %45 : vector<8x1xf32>
    %47 = vector.broadcast %46 : vector<8x1xf32> to vector<8x128xf32>
    %48 = arith.subf %42, %47 : vector<8x128xf32>
    %c0_17 = arith.constant 0 : index
    %c0_18 = arith.constant 0 : index
    %49 = vector.load %arg8[%c0_17, %c0_18] : memref<1x128xf32, #tpu.memory_space<vmem>>, vector<1x128xf32>
    %50 = vector.broadcast %49 : vector<1x128xf32> to vector<8x128xf32>
    %51 = arith.mulf %48, %50 : vector<8x128xf32>
    %52 = arith.mulf %51, %51 : vector<8x128xf32>
    %cst_19 = arith.constant dense<0.000000e+00> : vector<8xf32>
    %53 = vector.multi_reduction <add>, %52, %cst_19 [1] : vector<8x128xf32> to vector<8xf32>
    %54 = vector.shape_cast %53 : vector<8xf32> to vector<8x1xf32>
    %cst_20 = arith.constant 3.125000e-02 : f32
    %55 = vector.broadcast %cst_20 : f32 to vector<8x1xf32>
    %56 = arith.mulf %54, %55 : vector<8x1xf32>
    %cst_21 = arith.constant 9.99999974E-6 : f32
    %57 = vector.broadcast %cst_21 : f32 to vector<8x1xf32>
    %58 = arith.addf %56, %57 : vector<8x1xf32>
    %59 = math.rsqrt %58 : vector<8x1xf32>
    %60 = vector.broadcast %59 : vector<8x1xf32> to vector<8x128xf32>
    %61 = arith.mulf %51, %60 : vector<8x128xf32>
    %c0_22 = arith.constant 0 : index
    %c0_23 = arith.constant 0 : index
    %62 = vector.load %arg6[%c0_22, %c0_23] : memref<1x128xf32, #tpu.memory_space<vmem>>, vector<1x128xf32>
    %63 = vector.broadcast %62 : vector<1x128xf32> to vector<8x128xf32>
    %64 = arith.mulf %61, %63 : vector<8x128xf32>
    %c0_24 = arith.constant 0 : index
    %c0_25 = arith.constant 0 : index
    %65 = vector.load %arg7[%c0_24, %c0_25] : memref<1x128xf32, #tpu.memory_space<vmem>>, vector<1x128xf32>
    %66 = vector.broadcast %65 : vector<1x128xf32> to vector<8x128xf32>
    %67 = arith.addf %64, %66 : vector<8x128xf32>
    %cst_26 = arith.constant 0.000000e+00 : f32
    %68 = vector.broadcast %cst_26 : f32 to vector<8x128xf32>
    %69 = arith.cmpf ogt, %67, %68 : vector<8x128xf32>
    %70 = math.exp %67 : vector<8x128xf32>
    %cst_27 = arith.constant 1.000000e+00 : f32
    %71 = vector.broadcast %cst_27 : f32 to vector<8x128xf32>
    %72 = arith.subf %70, %71 : vector<8x128xf32>
    %73 = arith.select %69, %67, %72 : vector<8x128xi1>, vector<8x128xf32>
    %c0_28 = arith.constant 0 : index
    %c0_29 = arith.constant 0 : index
    %c0_30 = arith.constant 0 : index
    %74 = vector.load %arg9[%c0_28, %c0_29, %c0_30] : memref<1x8x128xf32, #tpu.memory_space<vmem>>, vector<1x8x128xf32>
    %75 = vector.shape_cast %74 : vector<1x8x128xf32> to vector<8x128xf32>
    %76 = vector.shape_cast %73 : vector<8x128xf32> to vector<1x8x128xf32>
    tpu.vector_store %arg9[%c0_28, %c0_29, %c0_30], %76 {strides = array<i32>} : memref<1x8x128xf32, #tpu.memory_space<vmem>>, vector<1x8x128xf32>,
    return
  }
  func.func @transform_0(%arg0: i32, %arg1: i32) -> (i32, i32, i32) {
    %c0_i32 = arith.constant 0 : i32
    %c0_i32_0 = arith.constant 0 : i32
    %c0_i32_1 = arith.constant 0 : i32
    return %arg0, %c0_i32, %c0_i32_0 : i32, i32, i32
  }
  func.func @transform_1(%arg0: i32, %arg1: i32) -> (i32, i32, i32) {
    %c0_i32 = arith.constant 0 : i32
    %c0_i32_0 = arith.constant 0 : i32
    return %arg0, %arg1, %c0_i32 : i32, i32, i32
  }
  func.func @transform_2(%arg0: i32, %arg1: i32) -> (i32, i32) {
    %c0_i32 = arith.constant 0 : i32
    %c0_i32_0 = arith.constant 0 : i32
    %c0_i32_1 = arith.constant 0 : i32
    return %c0_i32, %c0_i32_0 : i32, i32
  }
  func.func @transform_3(%arg0: i32, %arg1: i32) -> (i32, i32) {
    %c0_i32 = arith.constant 0 : i32
    %c0_i32_0 = arith.constant 0 : i32
    %c0_i32_1 = arith.constant 0 : i32
    return %c0_i32, %c0_i32_0 : i32, i32
  }
  func.func @transform_4(%arg0: i32, %arg1: i32) -> (i32, i32) {
    %c0_i32 = arith.constant 0 : i32
    %c0_i32_0 = arith.constant 0 : i32
    %c0_i32_1 = arith.constant 0 : i32
    return %c0_i32, %c0_i32_0 : i32, i32
  }
  func.func @transform_5(%arg0: i32, %arg1: i32) -> (i32, i32) {
    %c0_i32 = arith.constant 0 : i32
    %c0_i32_0 = arith.constant 0 : i32
    %c0_i32_1 = arith.constant 0 : i32
    return %c0_i32, %c0_i32_0 : i32, i32
  }
  func.func @transform_6(%arg0: i32, %arg1: i32) -> (i32, i32) {
    %c0_i32 = arith.constant 0 : i32
    %c0_i32_0 = arith.constant 0 : i32
    %c0_i32_1 = arith.constant 0 : i32
    return %c0_i32, %c0_i32_0 : i32, i32
  }
  func.func @transform_7(%arg0: i32, %arg1: i32) -> (i32, i32, i32) {
    %c0_i32 = arith.constant 0 : i32
    %c0_i32_0 = arith.constant 0 : i32
    return %arg0, %arg1, %c0_i32 : i32, i32, i32
  }
}

</mosaic_0001>

<bundles_post_ra>
// kernel: tpu_custom_call.1
= control target key start
LH: loop header
LB: loop body
LE: loop exit
PB: predicated region body
PF: predicated region fallthrough
CT: control target
= control target key end

     0   :  { %s1412_s0 = inlined_call_operand.hbm [shape: f32[2,8,16], index: 0, kind: input, shape index: {}]   ;;  %s1413_s1 = inlined_call_operand.hbm [shape: s8[2,8,8], index: 1, kind: input, shape index: {}]   ;;  %s1414_s2 = inlined_call_operand.hbm [shape: bf16[16,256], index: 2, kind: input, shape index: {}]   ;;  %s1415_s3 = inlined_call_operand.vmem [shape: f32[1,16], index: 3, kind: input, shape index: {}]   ;;  %s1416_s4 = inlined_call_operand.vmem [shape: f32[1,128], index: 4, kind: input, shape index: {}]   ;;  %s1417_s5 = inlined_call_operand.vmem [shape: f32[1,128], index: 5, kind: input, shape index: {}]   ;;  %s1418_s6 = inlined_call_operand.vmem [shape: f32[1,128], index: 6, kind: input, shape index: {}]   ;;  %s1419_s7 = inlined_call_operand.hbm [shape: f32[2,8,128], index: 7, kind: output, shape index: {}]  }
   0x1   :  { %1426 = sst [smem:[#allocation19_spill]] %s1412_s0 }
   0x2   :  { %1427 = sst [smem:[#allocation20_spill]] %s1414_s2 }
   0x3   :  { %12 = vsyncpa [#allocation6], 0 }
   0x4   :  { %14 = vsyncpa [#allocation6 + $0x1], 0 }
   0x5   :  { %15 = vsyncpa [#allocation9], 0 }
   0x6   :  { %17 = vsyncpa [#allocation9 + $0x1], 0 }
   0x7   :  { %18 = vsyncpa [#allocation7], 0 }
   0x8   :  { %20 = vsyncpa [#allocation7 + $0x1], 0  ;;  %s1139_s24 = smov 0   ;;  %s1141_s25 = smov 0  }
   0x9   :  { %s1143_s26 = smov 0   ;;  %s1145_s27 = smov 0  }
   0xa   :  { %s1147_s28 = smov 0   ;;  %s1149_s29 = smov 0  }
   0xb LB: > { %1428 = sst [smem:[#allocation16_spill]] %s1076_s26  ;;  %s1170_s30 = sadd.s32 4294967295, %s1088_s29   ;;  %s1088_s29 = sphi %s1149_s29, %s26_s29   ;;  %s1084_s28 = sphi %s1147_s28, %s1455_s28   ;;  %s1080_s27 = sphi %s1145_s27, %s1454_s27   ;;  %s1076_s26 = sphi %s1143_s26, %s1450_s26   ;;  %s1072_s25 = sphi %s1141_s25, %s1453_s25   ;;  %s1068_s24 = sphi %s1139_s24, %s1452_s24  }
   0xc   : > { %s772_s8 = sadd.s32 4294967294, %s1088_s29   ;;  %p58_p0 = scmp.ne.s32.totalorder %s1072_s25, %s1068_s24 }
   0xd   : > { %p1420_p1 = scmp.eq.s32.totalorder %s1170_s30, 0  ;;  %p223_p3 = scmp.eq.s32.totalorder %s772_s8, 1 }
   0xe   : > { %p773_p5 = scmp.ge.s32.totalorder %s1088_s29, 1  ;;  %p230_p7 = scmp.lt.s32.totalorder %s1088_s29, 3 }
   0xf   : > { %p1179_p4 = por %p1420_p1, %p58_p0  ;;  %p1184_p6 = por %p223_p3, %p58_p0 }
  0x10   : > { %p1189_p8 = pnand %p773_p5, %p230_p7  ;;  %s1090_s12 = smov [#allocation10]  }
  0x11   : > { %s1429_s9 = scalar_select %p1179_p4, 1, 0 }
  0x12   : > { %s1430_s10 = scalar_select %p1184_p6, 1, 0 }
  0x13   : > { %s1431_s11 = scalar_select %p1189_p8, 1, 0 }
  0x14   : > { %s242_s13 = sshll.u32 %s1090_s12, 4  ;;  %p825_p9 = pneg %p1189_p8  ;;  %s243_s13 = int_to_ptr.vmem [resolvable:$true] %s242_s13 }
  0x15   : > { %s38_s15 = sadd.s32 1, %s1084_s28  ;;  %s1433_s2 = sld [smem:[#allocation20_spill]] }
  0x16   : > { %p1198_p11 = pnand %p825_p9, %p1420_p1 }
  0x18   : > { %p912_p13 = pneg %p1198_p11 }
  0x1b   : > { %s910_s18 = scalar_lea.hbm %s1433_s2, 256 }
  0x1c   : > { %p911_p12 = scmp.ne.s32.totalorder %s1433_s2, %s910_s18  ;;  %p917_p5 = scmp.lt.u32.totalorder %s910_s18, %s1433_s2 }
  0x1e   : > { %p913_p0 = pnand %p912_p13, %p911_p12 }
  0x20   : > { %p914_p3 = pneg %p913_p0 }
  0x22   : > { %p919_p7 = pnand %p917_p5, %p914_p3 }
  0x24   : > { %922 = shalt.err (!%p919_p7)
}
  0x25   : > { %s923_s23 = scalar_lea.vmem %s243_s13, 256  ;;  %p931_p2 = scmp.lt.s32.totalorder %s243_s13, %s243_s13 }
  0x26   : > { %p924_p9 = scmp.ne.s32.totalorder %s243_s13, %s923_s23  ;;  %p932_p6 = scmp.lt.s32.totalorder %s923_s23, %s923_s23 }
  0x28   : > { %p926_p10 = pnand %p924_p9, %p912_p13  ;;  %p933_p4 = por %p932_p6, %p931_p2 }
  0x2a   : > { %p927_p1 = pneg %p926_p10 }
  0x2c   : > { %p934_p8 = pnand %p933_p4, %p927_p1 }
  0x2e   : > { %937 = shalt.err (!%p934_p8)
}
  0x2f   : > { %s1091_s8 = smov 128   ;;  %s1092_s12 = smov 8  }
  0x30   : > { %828 = dma.hbm_to_vmem [thread:$0]  (!%p1198_p11), %s1433_s2, 256, %s243_s13, [#allocation9], %s1091_s8, %s1091_s8, %s1092_s12  }
  0x31   : > { %p40_p1 = scmp.ge.s32.totalorder %s38_s15, 2  ;;  %s45_s18 = sadd.s32 1, %s1076_s26 }
  0x32   : > { %p52_p2 = scmp.ne.s32.totalorder %s1076_s26, %s1072_s25  ;;  %p53_p4 = scmp.eq.s32.totalorder %s1088_s29, 0 }
  0x33   : > { %s1457_s15 = smov (%p40_p1, %s38_s15), 0  ;;  %p1436_p8 = scmp.eq.s32.totalorder %s1170_s30, 1 }
  0x34   : > { %1434 = sst [smem:[#allocation17_spill]] %s1457_s15  ;;  %p1225_p6 = por %p53_p4, %p52_p2 }
  0x35   : > { %p1231_p10 = por %p1436_p8, %p52_p2  ;;  %s42_s20 = ssub.s32 %s1084_s28, %s1457_s15 }
  0x36   : > { %p841_p11 = scmp.lt.s32.totalorder %s1088_s29, 2  ;;  %p43_p12 = scmp.eq.s32.totalorder %s42_s20, 0 }
  0x37   : > { %s1437_s14 = scalar_select %p1231_p10, 1, 0 }
  0x38   : > { %s1239_s13 = sand.u32 1, %s1076_s26   ;;  %s777_s23 = sshll.u32 %s1084_s28, 7 }
  0x39   : > { %s776_s21 = sshll.u32 %s1239_s13, 3  ;;  %s1439_s0 = sld [smem:[#allocation19_spill]] }
  0x3a   : > { %s1243_s22 = scalar_select %p43_p12, %s1076_s26, %s45_s18  }
  0x3b   : > { %s272_s17 = scalar_lea.vmem [#allocation5], %s776_s21  ;;  %p1255_p13 = pnand %p841_p11, %p1225_p6 }
  0x3c   : > { %1438 = sst [smem:[#allocation18_spill]] %s1243_s22  ;;  %s279_s20 = sshll.u32 %s272_s17, 4  ;;  %s1251_s20 = int_to_ptr.vmem [resolvable:$true] %s279_s20 }
  0x3d   : > { %s778_s15 = sshll.u32 %s1239_s13, 1  ;;  %s269_s8 = scalar_lea.sflag [#allocation6], %s1239_s13 }
  0x3e   : > { %p940_p3 = pneg %p1255_p13 }
  0x3f   : > { %s1249_s16 = scalar_lea.hbm %s1439_s0, %s777_s23  ;;  %s943_s19 = scalar_lea.hbm %s1439_s0, 256 }
  0x40   : > { %s938_s23 = scalar_lea.hbm %s1249_s16, 128  ;;  %p944_p9 = scmp.lt.u32.totalorder %s1249_s16, %s1439_s0 }
  0x41   : > { %p939_p0 = scmp.ne.s32.totalorder %s1249_s16, %s938_s23  ;;  %p945_p1 = scmp.lt.u32.totalorder %s943_s19, %s938_s23 }
  0x42   : > { %p947_p4 = scmp.lt.u32.totalorder %s938_s23, %s1249_s16 }
  0x43   : > { %p941_p5 = pnand %p940_p3, %p939_p0  ;;  %p946_p2 = por %p945_p1, %p944_p9 }
  0x45   : > { %p942_p7 = pneg %p941_p5  ;;  %p948_p6 = por %p947_p4, %p946_p2 }
  0x47   : > { %p949_p8 = pnand %p948_p6, %p942_p7 }
  0x49   : > { %952 = shalt.err (!%p949_p8)
}
  0x4a   : > { %s953_s18 = scalar_lea.vmem %s1251_s20, 128  ;;  %s1093_s21 = smov [#allocation5]  }
  0x4b   : > { %p954_p11 = scmp.ne.s32.totalorder %s1251_s20, %s953_s18  ;;  %s958_s12 = sshll.u32 %s1093_s21, 4  ;;  %s959_s12 = int_to_ptr.vmem [resolvable:$false] %s958_s12 }
  0x4c   : > { %s960_s22 = scalar_lea.vmem %s959_s12, 256  ;;  %p961_p5 = scmp.lt.s32.totalorder %s1251_s20, %s959_s12 }
  0x4d   : > { %p956_p12 = pnand %p954_p11, %p940_p3  ;;  %p962_p9 = scmp.lt.s32.totalorder %s960_s22, %s953_s18 }
  0x4f   : > { %p957_p0 = pneg %p956_p12  ;;  %p963_p1 = por %p962_p9, %p961_p5 }
  0x51   : > { %p964_p2 = pnand %p963_p1, %p957_p0 }
  0x53   : > { %967 = shalt.err (!%p964_p2)
}
  0x54   : > { %832 = dma.hbm_to_vmem [thread:$0]  (!%p1255_p13), %s1249_s16, 128, %s1251_s20, %s269_s8  }
  0x55   : > { %s779_s23 = sshll.u32 %s1084_s28, 5  ;;  %s290_s18 = scalar_lea.vmem [#allocation8], %s778_s15 }
  0x56   : > { %s1291_s21 = scalar_lea.hbm %s1413_s1, %s779_s23  ;;  %s298_s12 = sshll.u32 %s290_s18, 4  ;;  %s299_s12 = int_to_ptr.vmem [resolvable:$true] %s298_s12 }
  0x57   : > { %s1441_s22 = sand.u32 1, %s1088_s29   ;;  %s968_s26 = scalar_lea.hbm %s1291_s21, 32 }
  0x58   : > { %s287_s0 = scalar_lea.sflag [#allocation9], %s1441_s22  ;;  %p969_p7 = scmp.ne.s32.totalorder %s1291_s21, %s968_s26 }
  0x59   : > { %s973_s8 = scalar_lea.hbm %s1413_s1, 64  ;;  %p974_p8 = scmp.lt.u32.totalorder %s1291_s21, %s1413_s1 }
  0x5a   : > { %p971_p4 = pnand %p969_p7, %p940_p3  ;;  %p975_p11 = scmp.lt.u32.totalorder %s973_s8, %s968_s26 }
  0x5b   : > { %p977_p0 = scmp.lt.u32.totalorder %s968_s26, %s1291_s21 }
  0x5c   : > { %p972_p6 = pneg %p971_p4  ;;  %p976_p12 = por %p975_p11, %p974_p8 }
  0x5e   : > { %p978_p5 = por %p977_p0, %p976_p12 }
  0x60   : > { %p979_p9 = pnand %p978_p5, %p972_p6 }
  0x62   : > { %982 = shalt.err (!%p979_p9)
}
  0x63   : > { %s983_s15 = scalar_lea.vmem %s299_s12, 32  ;;  %s1094_s19 = smov [#allocation8]  }
  0x64   : > { %p984_p1 = scmp.ne.s32.totalorder %s299_s12, %s983_s15  ;;  %s988_s17 = sshll.u32 %s1094_s19, 4  ;;  %s989_s17 = int_to_ptr.vmem [resolvable:$false] %s988_s17 }
  0x65   : > { %s990_s18 = scalar_lea.vmem %s989_s17, 64  ;;  %p991_p4 = scmp.lt.s32.totalorder %s299_s12, %s989_s17 }
  0x66   : > { %p986_p2 = pnand %p984_p1, %p940_p3  ;;  %p992_p10 = scmp.lt.s32.totalorder %s990_s18, %s983_s15 }
  0x68   : > { %p987_p7 = pneg %p986_p2  ;;  %p993_p8 = por %p992_p10, %p991_p4 }
  0x6a   : > { %p994_p11 = pnand %p993_p8, %p987_p7 }
  0x6c   : > { %997 = shalt.err (!%p994_p11)
}
  0x6d   : > { %835 = dma.hbm_to_vmem [thread:$0]  (!%p1255_p13), %s1291_s21, 32, %s299_s12, %s287_s0  }
  0x6e   : > { %p1442_p6 = scmp.ne.s32.totalorder %s1431_s11, 0 }
  0x6f   : > { %s1319_s26 = sand.u32 (!%p1442_p6), 1, %s1072_s25   ;;  %p1443_p10 = scmp.ne.s32.totalorder (!%p1442_p6), %s1429_s9, 0 }
  0x70   : > { %307 = sbr.rel (%p1442_p6) target bundleno = 1359 (0x54f), region = 48  ;;  %s781_s22 = sshll.u32 (!%p1442_p6), %s1319_s26, 3 }
  0x71   : > { %s310_s16 = scalar_lea.sflag (!%p1442_p6), [#allocation6], %s1319_s26  ;;  %s313_s20 = scalar_lea.vmem (!%p1442_p6), [#allocation5], %s781_s22 }
  0x77   : > { %1051 = dma.done.wait (%p1443_p10), %s310_s16, 128  }
  0x78   : > { %1053 = vsyncadd (%p1443_p10), %s310_s16, 4294967168  ;;  %s318_s0 = sand.u32 1, %s1170_s30   ;;  %s782_s2 = sshll.u32 %s1319_s26, 1 }
  0x79   : > { %s319_s11 = scalar_lea.sflag [#allocation9], %s318_s0  ;;  %s1331_s21 = scalar_lea.vmem [#allocation8], %s782_s2 }
  0x7a   : > { %1055 = dma.done.wait (%p1443_p10), %s319_s11, 32  }
  0x7b   : > { %1057 = vsyncadd (%p1443_p10), %s319_s11, 4294967264  ;;  %p1444_p13 = scmp.eq.s32.totalorder %s1170_s30, 0 }
  0x7d   : > { %1059 = dma.done.wait (%p1444_p13), [#allocation9], 256   ;;  %p1445_p3 = pmov %p1444_p13 }
  0x7e   : > { %v1095_v0 = vmov 0   ;;  %v1096_v1 = vmov 0.0   ;;  %vm1097_vm0 = vmmov 0   ;;  %v899_v2 = vld [vmem:[#allocation10 + $0x4] ss:$8 sps:$4 sm:$0xff]   ;;  %vm381_vm1 = vcmask 130048  }
  0x7f   : > { %1061 = vsyncadd (%p1445_p3), [#allocation9], 4294967040  ;;  %417 = vmatprep.mubr.bf16.mxu0 %v1095_v0  ;;  %804 = vmatprep.subr.mxu1 %v1096_v1  ;;  %v901_v3 = vld [vmem:[#allocation10] ss:$8 sps:$4 sm:$0xff]   ;;  %v367_v4 = vld [vmem:[%s313_s20] sm:$0xff]  ;;  %vm507_vm2 = vcmask 57344  }
  0x80   : > { %806 = vmatprep.mubr.msk.f32.mxu1 %vm1097_vm0, %v1096_v1  ;;  %898 = vset.pattern.permute.xlu0 %v1095_v0  ;;  %v368_v5 = vpack.c.bf16 %v367_v4, %v367_v4  ;;  %v430_v6 = vld [vmem:[%s1415_s3] sm:$0x1]  ;;  %vm557_vm3 = vcmask 1043456   ;;  %v532_v16 = vld [vmem:[%s1331_s21] sm:$0x3]  ;;  %vm536_vm6 = vcmask 64512  }
  0x81   : > { %385 = vmatprep.subr.bf16.mxu0 %v899_v2  ;;  %805 = vmatpush3.xpose.msk.msra.mxu1 %vm381_vm1, %v367_v4  ;;  %v533_v18 = vunpack.c.0.s8 %v532_v16  ;;  %v792_v44 = vld [vmem:[%s1418_s6] ss:$0 sm:$0xff]  ;;  %s797_s17 = sshll.u32 %s1080_s27, 7  ;;  %s361_s18 = scalar_lea.vmem [#allocation11], %s781_s22 }
  0x82   : > { %386 = vmatpush1.bf16.msra.mxu0 %v901_v3  ;;  %809 = vmatprep.subr.bf16.mxu1 %v1096_v1  ;;  %v793_v52 = vld [vmem:[%s1416_s4] ss:$0 sm:$0xff]  ;;  %s657_s16 = sshll.u32 %s361_s18, 4  ;;  %s1363_s2 = scalar_lea.hbm %s1419_s7, %s797_s17  ;;  %s1365_s16 = int_to_ptr.vmem [resolvable:$true] %s657_s16 }
  0x83   : > { %vm534_vm5 = vcmp.gt.s32.totalorder %v533_v18, 0  ;;  %v794_v54 = vld [vmem:[%s1417_s5] ss:$0 sm:$0xff]  ;;  %s643_s11 = scalar_lea.sflag [#allocation7], %s1319_s26  ;;  %s998_s27 = scalar_lea.vmem %s1365_s16, 128 }
  0x84   : > { %807 = vmatmul.mubr.msk.f32.vlgmr.msra.gmra.mrb[0].mxu1 %vm381_vm1, %v430_v6  ;;  %p999_p12 = scmp.ne.s32.totalorder %s1365_s16, %s998_s27  ;;  %p1446_p0 = scmp.ne.s32.totalorder %s1437_s14, 0 }
  0x85   : > { %787 = vmatmul.mubr.msk.bf16.vlgmr.msra.gmra.mrb[0].mxu0 %vm381_vm1, %v368_v5  ;;  %811 = vmatprep.mubr.msk.bf16.mxu1 %vm1097_vm0, %v1096_v1  ;;  %s1098_s22 = smov [#allocation11]  }
  0x86   : > { %p1000_p5 = pnand %p999_p12, %p1446_p0  ;;  %s1002_s21 = sshll.u32 %s1098_s22, 4  ;;  %s1003_s21 = int_to_ptr.vmem [resolvable:$false] %s1002_s21 }
  0x87   : > { %s1004_s9 = scalar_lea.vmem %s1003_s21, 256  ;;  %p1005_p1 = scmp.lt.s32.totalorder %s1365_s16, %s1003_s21 }
  0x88   : > { %p1001_p9 = pneg %p1000_p5  ;;  %p1006_p2 = scmp.lt.s32.totalorder %s1004_s9, %s998_s27 }
  0x8a   : > { %p1007_p7 = por %p1006_p2, %p1005_p1 }
  0x8c   : > { %p1008_p4 = pnand %p1007_p7, %p1001_p9 }
 0x157   : > { %v503_v7 = vpop.f32.mrb[0].mxu1 }
 0x158   : > { %v419_v8 = vpop.f32.mrb[0].mxu0  ;;  %508 = vst.msk [vmem:[#allocation4] sm:$0x1] %vm507_vm2, %v503_v7  ;;  %v808_v9 = vpop.f32.mrb[1].mxu1 }
 0x159   : > { %v428_v10 = vpack.c.bf16 %v419_v8, %v419_v8  ;;  %v421_v11 = vpop.f32.mrb[1].mxu0 }
 0x15a   : > { %519 = vperm.xlu0 %898, %v421_v11   ;;  %v423_v12 = vpop.f32.mrb[2].mxu0 }
 0x15b   : > { %429 = vst [vmem:[#allocation3] sm:$0xf] %v428_v10  ;;  %v424_v13 = vpop.f32.mrb[3].mxu0 }
 0x15f   : > { %v790_v17 = vld [vmem:[#allocation4] ss:$0 sm:$0xff] }
 0x162   : > { %v553_v14 = vld [vmem:[#allocation3] sm:$0xf] }
 0x163   : > { %v559_v15 = vsel %vm557_vm3, %v553_v14, 0 }
 0x164   : > { %810 = vmatpush3.bf16.msra.mxu1 %v559_v15 }
 0x1d9   : > { %v520_v19 = vpop.permute.xlu0 %519 }
 0x1da   : > { %v528_v20 = vadd.f32 %v790_v17, %v520_v19 }
 0x1dc   : > { %v530_v21 = vmul.f32 0.2, %v528_v20  ;;  %vm529_vm4 = vcmp.gt.f32.partialorder %v528_v20, 0.0 }
 0x1de   : > { %v531_v22 = vsel %vm529_vm4, %v528_v20, %v530_v21 }
 0x1df   : > { %v535_v23 = vsel %vm534_vm5, %v531_v22, -9e+15 }
 0x1e0   : > { %v537_v24 = vsel %vm536_vm6, %v535_v23, -inf }
 0x1e1   : > { %538 = vmax.xlane.f32.xlu0 %v537_v24 }
 0x26e   : > { %v539_v25 = vpop.xlane.xlu0 %538 }
 0x26f   : > { %v540_v26 = vsub.f32 %v535_v23, %v539_v25 }
 0x271   : > { %v541_v27 = vmul.f32 1.442695, %v540_v26 }
 0x273   : > { %902 = vpow2.f32 %v541_v27 }
 0x27d   : > { %v903_v28 = vpop.eup %902 }
 0x27e   : > { %v543_v29 = vsel %vm536_vm6, %v903_v28, 0.0 }
 0x27f   : > { %544 = vadd.xlane.f32.xlu1 %v543_v29 }
 0x30c   : > { %v545_v30 = vpop.xlane.xlu1 %544 }
 0x30d   : > { %904 = vrcp.f32 %v545_v30 }
 0x317   : > { %v905_v31 = vpop.eup %904 }
 0x318   : > { %v547_v32 = vmul.f32 %v905_v31, %v545_v30 }
 0x31a   : > { %v548_v33 = vsub.f32 2.0, %v547_v32 }
 0x31c   : > { %v549_v34 = vmul.f32 %v905_v31, %v548_v33 }
 0x31e   : > { %v550_v35 = vmul.f32 %v903_v28, %v549_v34 }
 0x320   : > { %v552_v36 = vpack.c.bf16 %v550_v35, %v550_v35 }
 0x322   : > { %812 = vmatmul.mubr.msk.bf16.vlgmr.msra.gmra.mrb[4].mxu1 %vm536_vm6, %v552_v36 }
 0x3f5   : > { %v595_v37 = vpop.f32.mrb[4].mxu1 }
 0x3f6   : > { %v596_v38 = vadd.f32 %v595_v37, %v419_v8  ;;  %v813_v39 = vpop.f32.mrb[5].mxu1 }
 0x3f7   : > { %v598_v40 = vpop.f32.mrb[6].mxu1 }
 0x3f8   : > { %601 = vadd.xlane.f32.xlu1 %v596_v38  ;;  %v814_v41 = vpop.f32.mrb[7].mxu1 }
 0x485   : > { %v602_v42 = vpop.xlane.xlu1 %601 }
 0x486   : > { %v603_v43 = vmul.f32 0.03125, %v602_v42 }
 0x488   : > { %v604_v45 = vsub.f32 %v596_v38, %v603_v43 }
 0x48a   : > { %v612_v46 = vmul.f32 %v792_v44, %v604_v45 }
 0x48c   : > { %v613_v47 = vmul.f32 %v612_v46, %v612_v46 }
 0x48e   : > { %614 = vadd.xlane.f32.xlu1 %v613_v47 }
 0x51b   : > { %v615_v48 = vpop.xlane.xlu1 %614 }
 0x51c   : > { %v616_v49 = vmul.f32 0.03125, %v615_v48 }
 0x51e   : > { %v617_v50 = vadd.f32 1e-05, %v616_v49 }
 0x520   : > { %906 = vrsqrt.f32 %v617_v50 }
 0x52a   : > { %v907_v51 = vpop.eup %906 }
 0x52b   : > { %v619_v53 = vmul.f32 %v907_v51, %v612_v46 }
 0x52d   : > { %v627_v55 = vmul.f32 %v793_v52, %v619_v53 }
 0x52f   : > { %v635_v56 = vadd.f32 %v794_v54, %v627_v55 }
 0x531   : > { %v637_v57 = vmul.f32 1.442695, %v635_v56  ;;  %vm636_vm7 = vcmp.gt.f32.partialorder %v635_v56, 0.0 }
 0x533   : > { %908 = vpow2.f32 %v637_v57 }
 0x53d   : > { %v909_v58 = vpop.eup %908 }
 0x53e   : > { %v795_v59 = vadd.f32 -1.0, %v909_v58 }
 0x540   : > { %v640_v60 = vsel %vm636_vm7, %v635_v56, %v795_v59 }
 0x541   : > { %641 = vst [vmem:[%s361_s18] sm:$0xff] %v640_v60 }
 0x542   : > { %1011 = shalt.err (!%p1008_p4)
}
 0x543   : > { %s1012_s26 = scalar_lea.hbm %s1363_s2, 128  ;;  %s1016_s8 = scalar_lea.hbm %s1419_s7, 256 }
 0x544   : > { %p1013_p8 = scmp.ne.s32.totalorder %s1363_s2, %s1012_s26  ;;  %p1017_p10 = scmp.lt.u32.totalorder %s1363_s2, %s1419_s7 }
 0x545   : > { %p1018_p13 = scmp.lt.u32.totalorder %s1016_s8, %s1012_s26  ;;  %p1020_p12 = scmp.lt.u32.totalorder %s1012_s26, %s1363_s2 }
 0x546   : > { %p1014_p11 = pnand %p1013_p8, %p1446_p0 }
 0x547   : > { %p1019_p3 = por %p1018_p13, %p1017_p10 }
 0x548   : > { %p1015_p6 = pneg %p1014_p11 }
 0x549   : > { %p1021_p5 = por %p1020_p12, %p1019_p3 }
 0x54b   : > { %p1022_p9 = pnand %p1021_p5, %p1015_p6 }
 0x54d   : > { %1025 = shalt.err (!%p1022_p9)
}
 0x54e   : > { %823 = dma.vmem_to_hbm [thread:$0]  (%p1446_p0), %s1365_s16, 128, %s1363_s2, %s643_s11  }
 0x54f PF: > { %s669_s15 = sand.u32 1, %s1068_s24   ;;  %p1447_p1 = scmp.ne.s32.totalorder %s1430_s10, 0 }
 0x550   : > { %p1448_p2 = scmp.ge.s32.totalorder %s1088_s29, 2  ;;  %s670_s19 = scalar_lea.sflag [#allocation7], %s669_s15 }
 0x552   : > { %p837_p7 = pnand %p1448_p2, %p1447_p1 }
 0x554   : > { %1063 = dma.done.wait (!%p837_p7), %s670_s19, 128  }
 0x555   : > { %1065 = vsyncadd (!%p837_p7), %s670_s19, 4294967168  ;;  %s26_s29 = sadd.s32 1, %s1088_s29   ;;  %s1449_s17 = sld [smem:[#allocation16_spill]] }
 0x556   : > { %p23_p4 = scmp.ge.s32.totalorder %s26_s29, 4   ;;  %s1450_s26 = sld [smem:[#allocation18_spill]] }
 0x557   : > { %s1451_s14 = sld [smem:[#allocation17_spill]]  ;;  %s1452_s24 = smov %s1072_s25 }
 0x558   : > { %s1454_s27 = smov %s1084_s28  ;;  %25 = sbr.rel (!%p23_p4) target bundleno = 11 (0xb), region = 115 }
 0x55b   : > { %s1453_s25 = smov %s1449_s17 }
 0x55d   : > { %s1455_s28 = smov %s1451_s14 }
 0x55f   :  { %675 = vsyncpa [#allocation6], 1 }
 0x560   :  { %677 = vsyncpa [#allocation6 + $0x1], 1 }
 0x561   :  { %678 = vsyncpa [#allocation9], 1 }
 0x562   :  { %680 = vsyncpa [#allocation9 + $0x1], 1 }
 0x563   :  { %681 = vsyncpa [#allocation7], 1 }
 0x564   :  { %683 = vsyncpa [#allocation7 + $0x1], 1 }

</bundles_post_ra>
